<compile_context>
chip_gen: v6e
topology: v6e:2x2x1
jax: 0.10.0
libtpu: 0.0.40
codegen_flags: <defaults>
</compile_context>

<pallas_src>
import functools

import jax
import jax.numpy as jnp
from jax.experimental import pallas as pl
from jax.experimental.pallas import tpu as pltpu

N_PAD = 128      # lane-dense combined slab width (>= hidden_size + output_size)
SUBLANE = 8      # f32 sublane count
MAX_TC = 16      # max timesteps fused per grid step (unrolled inner loop)
NEG_INF = -1e30  # additive mask value for non-output columns (finite -> no NaNs)


def _round_up(n, m):
    return ((n + m - 1) // m) * m


def _largest_divisor(n, cap):
    for d in range(min(n, cap), 0, -1):
        if n % d == 0:
            return d
    return 1


def prepare_params(w_i2h, b_i2h, w_i2o, b_i2o, input_size, hidden_size):
    """Fold i2h / i2o into a concat-free, lane-dense layout (done once, outside).

    Weights are stored (in_features, out_features) (transposed vs torch nn.Linear).
    Returns (w_x, w_h, b, mask):
      w_x  : (input_size, N_PAD) f32   x-half of [w_i2h | w_i2o], zero-padded to 128
      w_h  : (N_PAD, N_PAD)      bf16  h-half; rows >= hidden_size are ZERO so the
                                       full 128-wide pre-softmax slab can be fed back
      b    : (1, N_PAD)          f32   [b_i2h | b_i2o], zero-padded
      mask : (1, N_PAD)          f32   additive log_softmax mask: 0 on output cols,
                                       -1e30 elsewhere (hoisted out of the kernel)
    """
    H = hidden_size
    O = w_i2o.shape[1]
    assert H + O <= N_PAD, "hidden_size + output_size must fit one 128-lane slab"
    w_cat = jnp.concatenate([w_i2h, w_i2o], axis=1)               # (fan_in, H+O)
    w_cat = jnp.pad(w_cat, ((0, 0), (0, N_PAD - (H + O))))        # (fan_in, N_PAD)
    w_x = w_cat[:input_size].astype(jnp.float32)                  # (input, N_PAD)
    w_h = jnp.pad(w_cat[input_size:], ((0, N_PAD - H), (0, 0)))   # (N_PAD, N_PAD)
    w_h = w_h.astype(jnp.bfloat16)                                # bf16 MXU operand
    b = jnp.concatenate([b_i2h, b_i2o], axis=1)
    b = jnp.pad(b, ((0, 0), (0, N_PAD - (H + O)))).astype(jnp.float32)
    col = jnp.arange(N_PAD)
    mask = jnp.where((col >= H) & (col < H + O), 0.0, NEG_INF)
    mask = mask.astype(jnp.float32)[None, :]                      # (1, N_PAD)
    return w_x, w_h, b, mask


def _cell_math(h, xwb_t, wh, mask):
    """One recurrent step on the lane-dense slab.

    Returns (y, log_softmax_slab):
      y     : pre-softmax accumulator; cols [0, H) are the new hidden state. This is
              what gets fed back (rows >= H of Wh are zero -> identical recurrence),
              keeping the EUP/XLU softmax chain off the serial critical path.
      logsm : log_softmax over output columns (other columns are don't-care).
    """
    y = jnp.dot(h.astype(jnp.bfloat16), wh,
                preferred_element_type=jnp.float32) + xwb_t
    ym = y + mask                                   # -1e30 on non-output columns
    m = jnp.max(ym, axis=1, keepdims=True)
    shifted = ym - m
    lse = jnp.log(jnp.sum(jnp.exp(shifted), axis=1, keepdims=True))
    return y, shifted - lse


def rnn_cell_kernel(x_ref, h_ref, wx_ref, wh_ref, b_ref, mask_ref, out_ref, hy_ref):
    xwb = (jnp.dot(x_ref[...], wx_ref[...], preferred_element_type=jnp.float32)
           + b_ref[...])
    y, logsm = _cell_math(h_ref[...], xwb, wh_ref[...], mask_ref[...])
    out_ref[...] = logsm         # cols [H, H+O) = log_softmax(logits)
    hy_ref[...] = y              # cols [0, H)   = new hidden


def rnn_seq_kernel(xwb_ref, h0_ref, wh_ref, mask_ref, out_ref, hlast_ref, h_scratch,
                   *, t_chunk):
    # Hidden state lives in VMEM scratch across the whole (serial) time-chunk axis.
    @pl.when(pl.program_id(1) == 0)
    def _():
        h_scratch[...] = h0_ref[...]

    wh = wh_ref[...]        # (N_PAD, N_PAD) bf16, hoisted out of the unrolled loop
    mask = mask_ref[...]    # (1, N_PAD) additive mask, hoisted

    def body(i, h):
        # Only h @ Wh sits on the recurrent critical path; x @ Wx + b was hoisted.
        y, logsm = _cell_math(h, xwb_ref[i], wh, mask)
        out_ref[i] = logsm       # store slot; independent of the carried state
        return y                 # pre-softmax feedback (no EUP/XLU dependency)

    h_final = jax.lax.fori_loop(0, t_chunk, body, h_scratch[...], unroll=True)
    h_scratch[...] = h_final
    hlast_ref[...] = h_final     # resident output block; flushed once per batch block


def rnn_cell(x, h, params):
    """One RNN step (matches RNN.forward). Returns (log_softmax_output, new_hidden)."""
    w_x, w_h, b, mask, hidden_size, output_size = params
    B, input_size = x.shape
    B_pad = max(_round_up(B, SUBLANE), SUBLANE)
    x_p = jnp.zeros((B_pad, input_size), jnp.float32).at[:B].set(x)
    h_p = jnp.zeros((B_pad, N_PAD), jnp.float32).at[:B, :hidden_size].set(h)
    out_slab, hy_slab = pl.pallas_call(
        rnn_cell_kernel,
        out_shape=(jax.ShapeDtypeStruct((B_pad, N_PAD), jnp.float32),
                   jax.ShapeDtypeStruct((B_pad, N_PAD), jnp.float32)),
        in_specs=[pl.BlockSpec(memory_space=pltpu.VMEM)] * 6,
        out_specs=(pl.BlockSpec(memory_space=pltpu.VMEM),
                   pl.BlockSpec(memory_space=pltpu.VMEM)),
    )(x_p, h_p, w_x, w_h, b, mask)
    out = out_slab[:B, hidden_size:hidden_size + output_size]
    h_new = hy_slab[:B, :hidden_size]
    return out, h_new


def rnn_sequence(xs, h0, params):
    """Run T recurrent steps in a single fused pallas_call (Tc steps per grid iter).

    xs: (T, B, input_size), h0: (B, hidden_size)
    Returns (log_softmax outputs (T, B, O), final hidden (B, H)).
    """
    w_x, w_h, b, mask, hidden_size, output_size = params
    T, B, input_size = xs.shape
    B_pad = max(_round_up(B, SUBLANE), SUBLANE)
    # One batch block unless batch is large (then v7x megacore shards blocks).
    BB = 256 if (B_pad > 256 and B_pad % 256 == 0) else B_pad
    Tc = _largest_divisor(T, MAX_TC)          # timesteps fused per grid step

    xs_p = jnp.zeros((T, B_pad, input_size), jnp.float32).at[:, :B].set(xs)
    h0_p = jnp.zeros((B_pad, N_PAD), jnp.float32).at[:B, :hidden_size].set(h0)
    # Hoisted input projection + bias: one big (T*B, in) x (in, 128) matmul outside
    # the recurrence; the serial kernel then streams a lane-dense 128-wide block.
    xwb = (xs_p @ w_x + b).astype(jnp.float32)                    # (T, B_pad, N_PAD)

    n_bb, n_tc = B_pad // BB, T // Tc
    out_slab, h_slab = pl.pallas_call(
        functools.partial(rnn_seq_kernel, t_chunk=Tc),
        out_shape=(jax.ShapeDtypeStruct((T, B_pad, N_PAD), jnp.float32),
                   jax.ShapeDtypeStruct((B_pad, N_PAD), jnp.float32)),
        grid=(n_bb, n_tc),
        in_specs=[
            pl.BlockSpec((Tc, BB, N_PAD), lambda bi, ti: (ti, bi, 0)),  # xwb streamed
            pl.BlockSpec((BB, N_PAD), lambda bi, ti: (bi, 0)),          # h0 (ti == 0)
            pl.BlockSpec((N_PAD, N_PAD), lambda bi, ti: (0, 0)),        # Wh pinned bf16
            pl.BlockSpec((1, N_PAD), lambda bi, ti: (0, 0)),            # additive mask
        ],
        out_specs=(
            pl.BlockSpec((Tc, BB, N_PAD), lambda bi, ti: (ti, bi, 0)),  # log_softmax
            pl.BlockSpec((BB, N_PAD), lambda bi, ti: (bi, 0)),          # final hidden
        ),
        scratch_shapes=[pltpu.VMEM((BB, N_PAD), jnp.float32)],
        compiler_params=pltpu.CompilerParams(
            # Batch blocks are independent (megacore-parallel on v7x);
            # time is the serial recurrence.
            dimension_semantics=("parallel", "arbitrary")),
    )(xwb, h0_p, w_h, mask)

    out_seq = out_slab[:, :B, hidden_size:hidden_size + output_size]
    h_final = h_slab[:B, :hidden_size]
    return out_seq, h_final


def rnn_cell_ref(x, h, w_i2h, b_i2h, w_i2o, b_i2o):
    """Pure-JAX reference (mirrors the PyTorch forward)."""
    combined = jnp.concatenate([x, h], axis=1)
    h_new = combined @ w_i2h + b_i2h
    logits = combined @ w_i2o + b_i2o
    return jax.nn.log_softmax(logits, axis=1), h_new


if __name__ == "__main__":
    batch = 2
    input_size = 16
    hidden_size = 32
    output_size = 8
    seq_len = 32            # -> 2 time chunks of 16: exercises the chunked recurrence

    key = jax.random.PRNGKey(0)
    k_x, k_xs, k_h, k_wih, k_bih, k_wio, k_bio = jax.random.split(key, 7)

    x = jax.random.normal(k_x, (batch, input_size), dtype=jnp.float32)
    xs = jax.random.normal(k_xs, (seq_len, batch, input_size), dtype=jnp.float32)
    hidden = jax.random.normal(k_h, (batch, hidden_size), dtype=jnp.float32)

    # Parameters stored as (in, out); biases kept 2-D (1, out).
    fan_in = input_size + hidden_size
    bound = 1.0 / (fan_in ** 0.5)
    w_i2h = jax.random.uniform(k_wih, (fan_in, hidden_size),
                               minval=-bound, maxval=bound, dtype=jnp.float32)
    b_i2h = jax.random.uniform(k_bih, (1, hidden_size),
                               minval=-bound, maxval=bound, dtype=jnp.float32)
    w_i2o = jax.random.uniform(k_wio, (fan_in, output_size),
                               minval=-bound, maxval=bound, dtype=jnp.float32)
    b_i2o = jax.random.uniform(k_bio, (1, output_size),
                               minval=-bound, maxval=bound, dtype=jnp.float32)

    params = prepare_params(w_i2h, b_i2h, w_i2o, b_i2o,
                            input_size, hidden_size) + (hidden_size, output_size)

    # bf16 MXU operands -> compare against the f32 reference with a looser tolerance.
    TOL = dict(atol=2e-2, rtol=2e-2)

    # --- Single step (matches RNN.forward) -----------------------------------
    out, h_new = rnn_cell(x, hidden, params)
    jax.block_until_ready((out, h_new))
    out_r, h_r = rnn_cell_ref(x, hidden, w_i2h, b_i2h, w_i2o, b_i2o)
    assert out.shape == (batch, output_size)
    assert h_new.shape == (batch, hidden_size)
    assert jnp.allclose(out, out_r, **TOL)
    assert jnp.allclose(h_new, h_r, **TOL)

    # --- Fused sequence: T steps, chunked grid, hidden resident in VMEM -------
    out_seq, h_final = rnn_sequence(xs, hidden, params)
    jax.block_until_ready((out_seq, h_final))
    h_ref = hidden
    outs_ref = []
    for t in range(seq_len):
        o_t, h_ref = rnn_cell_ref(xs[t], h_ref, w_i2h, b_i2h, w_i2o, b_i2o)
        outs_ref.append(o_t)
    out_seq_ref = jnp.stack(outs_ref)
    assert out_seq.shape == (seq_len, batch, output_size)
    assert h_final.shape == (batch, hidden_size)
    assert jnp.allclose(out_seq, out_seq_ref, **TOL)
    assert jnp.allclose(h_final, h_ref, **TOL)

    print("KERNEL_OK")
</pallas_src>

<mosaic_0001>
module attributes {stable_mosaic.version = 11 : i64} {
  func.func @rnn_cell_kernel(%arg0: memref<8x16xf32, #tpu.memory_space<vmem>>, %arg1: memref<8x128xf32, #tpu.memory_space<vmem>>, %arg2: memref<16x128xf32, #tpu.memory_space<vmem>>, %arg3: memref<128x128xbf16, #tpu.memory_space<vmem>>, %arg4: memref<1x128xf32, #tpu.memory_space<vmem>>, %arg5: memref<1x128xf32, #tpu.memory_space<vmem>>, %arg6: memref<8x128xf32, #tpu.memory_space<vmem>>, %arg7: memref<8x128xf32, #tpu.memory_space<vmem>>) attributes {dimension_semantics = [], scalar_prefetch = 0 : i64, scratch_operands = 0 : i64, tpu.core_type = #tpu.core_type<tc>} {
    %c0 = arith.constant 0 : index
    %c0_0 = arith.constant 0 : index
    %0 = vector.load %arg0[%c0, %c0_0] : memref<8x16xf32, #tpu.memory_space<vmem>>, vector<8x16xf32>
    %c0_1 = arith.constant 0 : index
    %c0_2 = arith.constant 0 : index
    %1 = vector.load %arg2[%c0_1, %c0_2] : memref<16x128xf32, #tpu.memory_space<vmem>>, vector<16x128xf32>
    %cst = arith.constant dense<0.000000e+00> : vector<8x128xf32>
    %2 = tpu.matmul %0, %1, %cst {dimension_numbers = #tpu.dot_dimension_numbers<[1], [0], [0], [1], [0, 0, 1, 1], [], []>} : vector<8x16xf32>, vector<16x128xf32>, vector<8x128xf32> -> vector<8x128xf32>
    %c0_3 = arith.constant 0 : index
    %c0_4 = arith.constant 0 : index
    %3 = vector.load %arg4[%c0_3, %c0_4] : memref<1x128xf32, #tpu.memory_space<vmem>>, vector<1x128xf32>
    %4 = vector.broadcast %3 : vector<1x128xf32> to vector<8x128xf32>
    %5 = arith.addf %2, %4 : vector<8x128xf32>
    %c0_5 = arith.constant 0 : index
    %c0_6 = arith.constant 0 : index
    %6 = vector.load %arg1[%c0_5, %c0_6] : memref<8x128xf32, #tpu.memory_space<vmem>>, vector<8x128xf32>
    %c0_7 = arith.constant 0 : index
    %c0_8 = arith.constant 0 : index
    %7 = vector.load %arg3[%c0_7, %c0_8] : memref<128x128xbf16, #tpu.memory_space<vmem>>, vector<128x128xbf16>
    %c0_9 = arith.constant 0 : index
    %c0_10 = arith.constant 0 : index
    %8 = vector.load %arg5[%c0_9, %c0_10] : memref<1x128xf32, #tpu.memory_space<vmem>>, vector<1x128xf32>
    %9 = arith.truncf %6 : vector<8x128xf32> to vector<8x128xbf16>
    %cst_11 = arith.constant dense<0.000000e+00> : vector<8x128xf32>
    %10 = tpu.matmul %9, %7, %cst_11 {dimension_numbers = #tpu.dot_dimension_numbers<[1], [0], [0], [1], [0, 0, 1, 1], [], []>} : vector<8x128xbf16>, vector<128x128xbf16>, vector<8x128xf32> -> vector<8x128xf32>
    %11 = arith.addf %10, %5 : vector<8x128xf32>
    %12 = vector.broadcast %8 : vector<1x128xf32> to vector<8x128xf32>
    %13 = arith.addf %11, %12 : vector<8x128xf32>
    %cst_12 = arith.constant dense<0xFF800000> : vector<8xf32>
    %14 = vector.multi_reduction <maximumf>, %13, %cst_12 [1] : vector<8x128xf32> to vector<8xf32>
    %15 = vector.shape_cast %14 : vector<8xf32> to vector<8x1xf32>
    %16 = vector.broadcast %15 : vector<8x1xf32> to vector<8x128xf32>
    %17 = arith.subf %13, %16 : vector<8x128xf32>
    %18 = math.exp %17 : vector<8x128xf32>
    %cst_13 = arith.constant dense<0.000000e+00> : vector<8xf32>
    %19 = vector.multi_reduction <add>, %18, %cst_13 [1] : vector<8x128xf32> to vector<8xf32>
    %20 = vector.shape_cast %19 : vector<8xf32> to vector<8x1xf32>
    %21 = math.log %20 : vector<8x1xf32>
    %22 = vector.broadcast %21 : vector<8x1xf32> to vector<8x128xf32>
    %23 = arith.subf %17, %22 : vector<8x128xf32>
    %c0_14 = arith.constant 0 : index
    %c0_15 = arith.constant 0 : index
    %24 = vector.load %arg6[%c0_14, %c0_15] : memref<8x128xf32, #tpu.memory_space<vmem>>, vector<8x128xf32>
    tpu.vector_store %arg6[%c0_14, %c0_15], %23 {strides = array<i32>} : memref<8x128xf32, #tpu.memory_space<vmem>>, vector<8x128xf32>,
    %c0_16 = arith.constant 0 : index
    %c0_17 = arith.constant 0 : index
    %25 = vector.load %arg7[%c0_16, %c0_17] : memref<8x128xf32, #tpu.memory_space<vmem>>, vector<8x128xf32>
    tpu.vector_store %arg7[%c0_16, %c0_17], %11 {strides = array<i32>} : memref<8x128xf32, #tpu.memory_space<vmem>>, vector<8x128xf32>,
    return
  }
}

</mosaic_0001>

<bundles_post_ra>
// kernel: tpu_custom_call.1
= control target key start
LH: loop header
LB: loop body
LE: loop exit
PB: predicated region body
PF: predicated region fallthrough
CT: control target
= control target key end

     0   :  { %13 = vsyncpa [#allocation3], 0  ;;  %s600_s0 = inlined_call_operand.hbm [shape: f32[8,16], index: 0, kind: input, shape index: {}]   ;;  %s601_s1 = inlined_call_operand.hbm [shape: f32[8,128], index: 1, kind: input, shape index: {}]   ;;  %s602_s2 = inlined_call_operand.hbm [shape: f32[16,128], index: 2, kind: input, shape index: {}]   ;;  %s603_s3 = inlined_call_operand.hbm [shape: bf16[128,128], index: 3, kind: input, shape index: {}]   ;;  %s604_s4 = inlined_call_operand.vmem [shape: f32[1,128], index: 4, kind: input, shape index: {}]   ;;  %s605_s5 = inlined_call_operand.vmem [shape: f32[1,128], index: 5, kind: input, shape index: {}]   ;;  %s606_s6 = inlined_call_operand.hbm [shape: f32[8,128], index: 6, kind: output, shape index: {0}]   ;;  %s607_s7 = inlined_call_operand.hbm [shape: f32[8,128], index: 7, kind: output, shape index: {1}]  }
   0x1   :  { %14 = vsyncpa [#allocation6], 0 }
   0x2   :  { %15 = vsyncpa [#allocation9], 0 }
   0x3   :  { %16 = vsyncpa [#allocation4], 0 }
   0x4   :  { %17 = vsyncpa [#allocation12], 0  ;;  %s524_s24 = smov [#allocation5]   ;;  %s525_s26 = smov [#allocation2]  }
   0x5   :  { %s34_s25 = sshll.u32 %s524_s24, 4  ;;  %s24_s27 = sshll.u32 %s525_s26, 4  ;;  %s35_s25 = int_to_ptr.vmem [resolvable:$true] %s34_s25  ;;  %s25_s27 = int_to_ptr.vmem [resolvable:$true] %s24_s27 }
   0x6   :  { %s402_s28 = scalar_lea.vmem %s35_s25, 128  ;;  %p407_p1 = scmp.lt.s32.totalorder %s35_s25, %s35_s25 }
   0x7   :  { %p403_p0 = scmp.ne.s32.totalorder %s35_s25, %s402_s28  ;;  %p408_p2 = scmp.lt.s32.totalorder %s402_s28, %s402_s28 }
   0x9   :  { %p409_p3 = por %p408_p2, %p407_p1 }
   0xb   :  { %p410_p4 = pnand %p409_p3, %p403_p0 }
   0xd   :  { %413 = shalt.err (!%p410_p4)
}
   0xe   :  { %37 = dma.hbm_to_vmem [thread:$0]  %s601_s1, 128, %s35_s25, [#allocation6]  }
   0xf   :  { %s422_s8 = scalar_lea.vmem %s25_s27, 128  ;;  %p427_p6 = scmp.lt.s32.totalorder %s25_s27, %s25_s27 }
  0x10   :  { %p423_p5 = scmp.ne.s32.totalorder %s25_s27, %s422_s8  ;;  %p428_p7 = scmp.lt.s32.totalorder %s422_s8, %s422_s8 }
  0x12   :  { %p429_p8 = por %p428_p7, %p427_p6 }
  0x14   :  { %p430_p9 = pnand %p429_p8, %p423_p5 }
  0x16   :  { %433 = shalt.err (!%p430_p9)
}
  0x17   :  { %27 = dma.hbm_to_vmem [thread:$0]  %s600_s0, 128, %s25_s27, [#allocation3]  }
  0x18   :  { %s526_s11 = smov [#allocation7]  }
  0x19   :  { %s43_s12 = sshll.u32 %s526_s11, 4  ;;  %s44_s12 = int_to_ptr.vmem [resolvable:$true] %s43_s12 }
  0x1a   :  { %s442_s13 = scalar_lea.vmem %s44_s12, 256  ;;  %p447_p11 = scmp.lt.s32.totalorder %s44_s12, %s44_s12 }
  0x1b   :  { %p443_p10 = scmp.ne.s32.totalorder %s44_s12, %s442_s13  ;;  %p448_p12 = scmp.lt.s32.totalorder %s442_s13, %s442_s13 }
  0x1d   :  { %p449_p13 = por %p448_p12, %p447_p11 }
  0x1f   :  { %p450_p0 = pnand %p449_p13, %p443_p10 }
  0x21   :  { %453 = shalt.err (!%p450_p0)
}
  0x22   :  { %s527_s1 = smov 128   ;;  %s528_s14 = smov 8  }
  0x23   :  { %49 = dma.hbm_to_vmem [thread:$0]  %s602_s2, 256, %s44_s12, [#allocation6], %s527_s1, %s527_s1, %s528_s14  }
  0x24   :  { %s529_s17 = smov [#allocation8]  }
  0x25   :  { %s55_s18 = sshll.u32 %s529_s17, 4  ;;  %s56_s18 = int_to_ptr.vmem [resolvable:$true] %s55_s18 }
  0x26   :  { %s462_s0 = scalar_lea.vmem %s56_s18, 1024  ;;  %p467_p2 = scmp.lt.s32.totalorder %s56_s18, %s56_s18 }
  0x27   :  { %p463_p1 = scmp.ne.s32.totalorder %s56_s18, %s462_s0  ;;  %p468_p3 = scmp.lt.s32.totalorder %s462_s0, %s462_s0 }
  0x29   :  { %p469_p4 = por %p468_p3, %p467_p2 }
  0x2b   :  { %p470_p5 = pnand %p469_p4, %p463_p1 }
  0x2d   :  { %473 = shalt.err (!%p470_p5)
}
  0x2e   :  { %s530_s19 = smov 64   ;;  %s531_s20 = smov 4  }
  0x2f   :  { %61 = dma.hbm_to_vmem [thread:$0]  %s603_s3, 1024, %s56_s18, [#allocation9], %s530_s19, %s530_s19, %s531_s20  }
  0x30   :  { %514 = dma.done.wait [#allocation3], 128  }
  0x31   :  { %515 = vsyncadd [#allocation3], 4294967168 }
  0x32   :  { %516 = dma.done.wait [#allocation6], 384  }
  0x33   :  { %517 = vsyncadd [#allocation6], 4294966912 }
  0x34   :  { %518 = dma.done.wait [#allocation9], 1024  }
  0x35   :  { %519 = vsyncadd [#allocation9], 4294966272  ;;  %v532_v0 = vmov 0.0   ;;  %vm533_vm0 = vmmov 0   ;;  %v382_v1 = vld [vmem:[#allocation8 + $0x38] sm:$0xff]   ;;  %v383_v2 = vld [vmem:[#allocation8 + $0x30] sm:$0xff]  }
  0x36   :  { %350 = vmatprep.subr.bf16.mxu1 %v532_v0  ;;  %343 = vmatprep.subr.mxu0 %v532_v0  ;;  %v384_v3 = vld [vmem:[#allocation8 + $0x28] sm:$0xff]   ;;  %v81_v4 = vld [vmem:[#allocation7 + $0x8] sm:$0xff]  ;;  %v80_v5 = vld [vmem:[#allocation7] sm:$0xff]  ;;  %vm89_vm1 = vcmask 130048  }
  0x37   :  { %347 = vmatprep.mubr.msk.f32.mxu0 %vm533_vm0, %v532_v0  ;;  %366 = vmatprep.mubr.msk.bf16.mxu1 %vm533_vm0, %v532_v0  ;;  %v79_v6 = vld [vmem:[#allocation2] sm:$0xff]  ;;  %v386_v8 = vld [vmem:[#allocation8 + $0x18] sm:$0xff]   ;;  %v387_v9 = vld [vmem:[#allocation8 + $0x10] sm:$0xff]  }
  0x38   :  { %351 = vmatpush3.bf16.msra.mxu1 %v382_v1  ;;  %344 = vmatpush3.msra.mxu0 %v81_v4  ;;  %v385_v7 = vld [vmem:[#allocation8 + $0x20] sm:$0xff]   ;;  %v388_v10 = vld [vmem:[#allocation8 + $0x8] sm:$0xff]  }
  0x39   :  { %352 = vmatprep.subr.bf16.mxu1 %v532_v0  ;;  %345 = vmatprep.subr.mxu0 %v532_v0  ;;  %v389_v11 = vld [vmem:[#allocation8] sm:$0xff]   ;;  %v163_v12 = vld [vmem:[#allocation5] sm:$0xff] }
  0x3a   :  { %346 = vmatpush3.msra.mxu0 %v80_v5  ;;  %v181_v13 = vpack.c.bf16 %v163_v12, %v163_v12  ;;  %v320_v16 = vld [vmem:[%s604_s4] ss:$0 sm:$0xff]  ;;  %s534_s4 = smov [#allocation11]  }
  0x3b   :  { %348 = vmatmul.mubr.msk.f32.vlgmr.msra.gmra.mxu0 %vm89_vm1, %v79_v6  ;;  %v330_v19 = vld [vmem:[%s605_s5] ss:$0 sm:$0xff]  ;;  %s305_s25 = sshll.u32 %s534_s4, 4  ;;  %s306_s25 = int_to_ptr.vmem [resolvable:$true] %s305_s25 }
  0x3c   :  { %353 = vmatpush3.bf16.msra.mxu1 %v383_v2  ;;  %s474_s26 = scalar_lea.vmem %s306_s25, 128  ;;  %p479_p7 = scmp.lt.s32.totalorder %s306_s25, %s306_s25 }
  0x3d   :  { %354 = vmatprep.subr.bf16.mxu1 %v532_v0  ;;  %p475_p6 = scmp.ne.s32.totalorder %s306_s25, %s474_s26  ;;  %p480_p8 = scmp.lt.s32.totalorder %s474_s26, %s474_s26 }
  0x3f   :  { %p481_p9 = por %p480_p8, %p479_p7 }
  0x40   :  { %355 = vmatpush3.bf16.msra.mxu1 %v384_v3 }
  0x41   :  { %356 = vmatprep.subr.bf16.mxu1 %v532_v0  ;;  %p482_p10 = pnand %p481_p9, %p475_p6 }
  0x44   :  { %357 = vmatpush3.bf16.msra.mxu1 %v385_v7 }
  0x45   :  { %358 = vmatprep.subr.bf16.mxu1 %v532_v0 }
  0x48   :  { %359 = vmatpush3.bf16.msra.mxu1 %v386_v8 }
  0x49   :  { %360 = vmatprep.subr.bf16.mxu1 %v532_v0 }
  0x4c   :  { %361 = vmatpush3.bf16.msra.mxu1 %v387_v9 }
  0x4d   :  { %362 = vmatprep.subr.bf16.mxu1 %v532_v0 }
  0x50   :  { %363 = vmatpush3.bf16.msra.mxu1 %v388_v10 }
  0x51   :  { %364 = vmatprep.subr.bf16.mxu1 %v532_v0 }
  0x54   :  { %365 = vmatpush3.bf16.msra.mxu1 %v389_v11 }
  0x57   :  { %367 = vmatmul.mubr.bf16.vlgmr.msra.gmra.mxu1 %v181_v13 }
  0xfb   :  { %v159_v14 = vpop.f32.mrf.mxu0 }
  0xfc   :  { %v160_v17 = vadd.f32 %v320_v16, %v159_v14 }
  0xfd   :  { %v349_v15 = vpop.f32.mrf.mxu0 }
 0x117   :  { %v264_v18 = vpop.f32.mrf.mxu1 }
 0x118   :  { %v265_v20 = vadd.f32 %v264_v18, %v160_v17 }
 0x119   :  { %v368_v21 = vpop.f32.mrf.mxu1 }
 0x11a   :  { %288 = vst [vmem:[#allocation11] sm:$0xff] %v265_v20  ;;  %v276_v22 = vadd.f32 %v330_v19, %v265_v20 }
 0x11b   :  { %v267_v23 = vpop.f32.mrf.mxu1 }
 0x11c   :  { %277 = vmax.xlane.f32.xlu0 %v276_v22 }
 0x11d   :  { %v369_v24 = vpop.f32.mrf.mxu1 }
 0x1a5   :  { %v278_v25 = vpop.xlane.xlu0 %277 }
 0x1a6   :  { %v279_v26 = vsub.f32 %v276_v22, %v278_v25 }
 0x1a8   :  { %v280_v27 = vmul.f32 1.442695, %v279_v26 }
 0x1aa   :  { %390 = vpow2.f32 %v280_v27 }
 0x1b7   :  { %v391_v28 = vpop.eup %390 }
 0x1b8   :  { %282 = vadd.xlane.f32.xlu0 %v391_v28 }
 0x1b9   :  { %485 = shalt.err (!%p482_p10)
}
 0x1ba   :  { %308 = dma.vmem_to_hbm [thread:$0]  %s306_s25, 128, %s607_s7, [#allocation12]  }
 0x1bb   :  { %s535_s28 = smov [#allocation10]  }
 0x1bc   :  { %s295_s29 = sshll.u32 %s535_s28, 4  ;;  %s296_s29 = int_to_ptr.vmem [resolvable:$true] %s295_s29 }
 0x1bd   :  { %s494_s30 = scalar_lea.vmem %s296_s29, 128  ;;  %p499_p12 = scmp.lt.s32.totalorder %s296_s29, %s296_s29 }
 0x1be   :  { %p495_p11 = scmp.ne.s32.totalorder %s296_s29, %s494_s30  ;;  %p500_p13 = scmp.lt.s32.totalorder %s494_s30, %s494_s30 }
 0x1c0   :  { %p501_p0 = por %p500_p13, %p499_p12 }
 0x1c2   :  { %p502_p1 = pnand %p501_p0, %p495_p11 }
 0x241   :  { %v283_v29 = vpop.xlane.xlu0 %282 }
 0x242   :  { %392 = vlog2.f32 %v283_v29 }
 0x24f   :  { %v393_v30 = vpop.eup %392 }
 0x250   :  { %v285_v31 = vmul.f32 0.6931472, %v393_v30 }
 0x252   :  { %v286_v32 = vsub.f32 %v279_v26, %v285_v31 }
 0x254   :  { %287 = vst [vmem:[#allocation10] sm:$0xff] %v286_v32 }
 0x255   :  { %505 = shalt.err (!%p502_p1)
}
 0x256   :  { %298 = dma.vmem_to_hbm [thread:$0]  %s296_s29, 128, %s606_s6, [#allocation4]  }
 0x257   :  { %520 = dma.done.wait [#allocation4], 128  }
 0x258   :  { %521 = vsyncadd [#allocation4], 4294967168 }
 0x259   :  { %522 = dma.done.wait [#allocation12], 128  }
 0x25a   :  { %523 = vsyncadd [#allocation12], 4294967168 }
 0x25b   :  { %315 = vsyncpa [#allocation3], 1 }
 0x25c   :  { %316 = vsyncpa [#allocation6], 1 }
 0x25d   :  { %317 = vsyncpa [#allocation9], 1 }
 0x25e   :  { %318 = vsyncpa [#allocation4], 1 }
 0x25f   :  { %319 = vsyncpa [#allocation12], 1 }

</bundles_post_ra>
